<compile_context>
chip_gen: v7x
topology: tpu7x:2x2x1
jax: 0.10.0
libtpu: 0.0.40
codegen_flags: <defaults>
</compile_context>

<pallas_src>
import math

import jax
import jax.numpy as jnp
import numpy as np
from jax import lax
from jax.experimental import pallas as pl
from jax.experimental.pallas import tpu as pltpu


def _round_up(x, m):
    return ((x + m - 1) // m) * m


# ---------------------------------------------------------------------------
# Pallas kernel: per-(batch, P-tile) partial-conv matmul + hole renorm.
# ---------------------------------------------------------------------------
def _partial_conv_kernel(xm_ref, mc_ref, w_ref, b_ref, out_ref, valid_ref):
    # xm_ref:    (1, K, TP)     im2col patches of (input * mask)
    # mc_ref:    (1, KHW, TP)   im2col patches of the channel-summed mask
    # w_ref:     (Cout, K)      conv weight, reshaped
    # b_ref:     (Cout, 1)      conv bias
    # out_ref:   (1, Cout, TP)
    # valid_ref: (1, 1, TP)     1.0 where the window saw any valid pixel, else 0.0
    xm = xm_ref[0]                                                     # (K, TP)

    # conv(input*mask) without bias -> lane-dense MXU result (Cout, TP)
    conv_nb = jnp.dot(w_ref[...], xm, preferred_element_type=jnp.float32)

    # conv(mask, weight=ones) == per-output-pixel sum of the mask patch.
    # mc already carries the Cin-sum, so only the KH*KW sublane reduction remains.
    mask_sum_raw = jnp.sum(mc_ref[0], axis=0, keepdims=True)           # (1, TP)

    no_update_holes = mask_sum_raw == 0.0                              # (1, TP)
    mask_sum = jnp.where(no_update_holes, 1.0, mask_sum_raw)           # (1, TP)

    # output_pre = (output - bias) / mask_sum + bias ; conv_nb == output - bias
    # (approx=False keeps full precision; flip to approx=True if tolerance allows)
    inv_mask_sum = pl.reciprocal(mask_sum, approx=False)               # (1, TP)
    out_pre = conv_nb * inv_mask_sum + b_ref[...]                      # (Cout, TP)

    out_ref[0] = jnp.where(no_update_holes, 0.0, out_pre)
    valid_ref[0] = jnp.logical_not(no_update_holes).astype(jnp.float32)


# ---------------------------------------------------------------------------
# JAX glue: transposed im2col + pallas_call + reshape back to NCHW.
# ---------------------------------------------------------------------------
def _im2col_t(x, kh, kw, stride, padding):
    """x: (N, C, H, W) -> (N, C*kh*kw, Hout*Wout), K ordered (C, kh, kw)."""
    n, c, h, w = x.shape
    xp = jnp.pad(x, ((0, 0), (0, 0), (padding, padding), (padding, padding)))
    hout = (h + 2 * padding - kh) // stride + 1
    wout = (w + 2 * padding - kw) // stride + 1
    cols = []
    for i in range(kh):
        for j in range(kw):
            cols.append(xp[:, :, i:i + stride * hout:stride, j:j + stride * wout:stride])
    col = jnp.stack(cols, axis=2)                       # (N, C, kh*kw, Hout, Wout)
    col = col.reshape(n, c * kh * kw, hout * wout)      # (N, K, P), lane dim = P
    return col, hout, wout


def partial_conv2d(x, mask, weight, bias, *, stride=1, padding=0):
    """Forward of PartialConv2d_Not_Official.

    x, mask: (N, Cin, H, W) float32
    weight:  (Cout, Cin, KH, KW) float32
    bias:    (Cout,) float32
    returns (output, new_mask), both (N, Cout, Hout, Wout) float32.
    """
    n, cin, h, w = x.shape
    cout, cin_w, kh, kw = weight.shape
    assert cin == cin_w

    x = x.astype(jnp.float32)
    mask = mask.astype(jnp.float32)

    # Hole-masking on the raw tensor (before im2col duplication).
    xm = x * mask

    xm_col, hout, wout = _im2col_t(xm, kh, kw, stride, padding)        # (N, K, P)
    mask_c = jnp.sum(mask, axis=1, keepdims=True)                      # (N, 1, H, W)
    mc_col, _, _ = _im2col_t(mask_c, kh, kw, stride, padding)          # (N, KHW, P)

    p = hout * wout
    k = cin * kh * kw
    khw = kh * kw

    # P tile: lane-dense (multiple of 128), modest size so double-buffered
    # tiles stay far under even the v5e 16 MiB scoped-VMEM default.
    tp = min(512, _round_up(p, 128))
    p_pad = _round_up(p, tp)
    if p_pad != p:
        pad_amt = ((0, 0), (0, 0), (0, p_pad - p))
        xm_col = jnp.pad(xm_col, pad_amt)
        mc_col = jnp.pad(mc_col, pad_amt)   # zero mask -> padded lanes become holes

    w2d = weight.reshape(cout, k).astype(jnp.float32)                  # (Cout, K)
    b2d = bias.reshape(cout, 1).astype(jnp.float32)                    # (Cout, 1)

    out_col, valid_col = pl.pallas_call(
        _partial_conv_kernel,
        out_shape=(
            jax.ShapeDtypeStruct((n, cout, p_pad), jnp.float32),
            jax.ShapeDtypeStruct((n, 1, p_pad), jnp.float32),
        ),
        grid_spec=pltpu.PrefetchScalarGridSpec(
            num_scalar_prefetch=0,
            grid=(n, p_pad // tp),
            in_specs=[
                pl.BlockSpec((1, k, tp), lambda b, t: (b, 0, t)),
                pl.BlockSpec((1, khw, tp), lambda b, t: (b, 0, t)),
                pl.BlockSpec((cout, k), lambda b, t: (0, 0)),
                pl.BlockSpec((cout, 1), lambda b, t: (0, 0)),
            ],
            out_specs=(
                pl.BlockSpec((1, cout, tp), lambda b, t: (b, 0, t)),
                pl.BlockSpec((1, 1, tp), lambda b, t: (b, 0, t)),
            ),
        ),
        compiler_params=pltpu.CompilerParams(
            dimension_semantics=("parallel", "parallel"),
            vmem_limit_bytes=32 * 1024 * 1024,
        ),
    )(xm_col, mc_col, w2d, b2d)

    # (N, Cout, P) -> NCHW directly; broadcast the single-channel validity map.
    out = out_col[:, :, :p].reshape(n, cout, hout, wout)
    valid = valid_col[:, :, :p].reshape(n, 1, hout, wout)
    new_mask = jnp.broadcast_to(valid, (n, cout, hout, wout))
    return out, new_mask


# ---------------------------------------------------------------------------
# Pure-JAX reference (mirrors the PyTorch forward exactly).
# ---------------------------------------------------------------------------
def partial_conv2d_ref(x, mask, weight, bias, *, stride=1, padding=0):
    dn = lax.conv_dimension_numbers(x.shape, weight.shape, ("NCHW", "OIHW", "NCHW"))
    strides = (stride, stride)
    pads = [(padding, padding), (padding, padding)]

    output = lax.conv_general_dilated(x * mask, weight, strides, pads,
                                      dimension_numbers=dn)
    output = output + bias.reshape(1, -1, 1, 1)
    output_bias = jnp.broadcast_to(bias.reshape(1, -1, 1, 1), output.shape)

    output_mask = lax.conv_general_dilated(mask, jnp.ones_like(weight), strides,
                                           pads, dimension_numbers=dn)
    no_update_holes = output_mask == 0.0
    mask_sum = jnp.where(no_update_holes, 1.0, output_mask)
    output_pre = (output - output_bias) / mask_sum + output_bias
    out = jnp.where(no_update_holes, 0.0, output_pre)
    new_mask = jnp.where(no_update_holes, 0.0, jnp.ones_like(out))
    return out, new_mask


if __name__ == "__main__":
    # Module config: PartialConv2d_Not_Official(in=4, out=8, kernel=3, stride=1, padding=1)
    N, Cin, H, W = 2, 4, 16, 16
    Cout, KH, KW = 8, 3, 3
    stride, padding = 1, 1

    key = jax.random.PRNGKey(0)
    kx, km, kw_, kb = jax.random.split(key, 4)

    x = jax.random.normal(kx, (N, Cin, H, W), dtype=jnp.float32)
    # binary mask with some zero "holes"
    mask = (jax.random.uniform(km, (N, Cin, H, W)) > 0.4).astype(jnp.float32)

    # Deterministic kaiming-like init; nonzero bias exercises the renorm path.
    fan_in = Cin * KH * KW
    kaiming_std = math.sqrt(2.0 / fan_in)
    weight = kaiming_std * jax.random.normal(kw_, (Cout, KH * 0 + KH, KW), dtype=jnp.float32) \
        if False else kaiming_std * jax.random.normal(kw_, (Cout, Cin, KH, KW), dtype=jnp.float32)
    bias = 0.1 * jax.random.normal(kb, (Cout,), dtype=jnp.float32)

    out, new_mask = partial_conv2d(x, mask, weight, bias, stride=stride, padding=padding)
    out, new_mask = jax.block_until_ready(out), jax.block_until_ready(new_mask)

    out_ref, new_mask_ref = partial_conv2d_ref(x, mask, weight, bias,
                                               stride=stride, padding=padding)
    np.testing.assert_allclose(np.asarray(out), np.asarray(out_ref),
                               rtol=2e-3, atol=2e-3)
    np.testing.assert_allclose(np.asarray(new_mask), np.asarray(new_mask_ref),
                               rtol=0, atol=0)

    print("KERNEL_OK")
</pallas_src>

<mosaic_0001>
module attributes {stable_mosaic.version = 11 : i64} {
  func.func @_partial_conv_kernel(%arg0: i32, %arg1: i32, %arg2: memref<1x36x256xf32, #tpu.memory_space<vmem>>, %arg3: memref<1x9x256xf32, #tpu.memory_space<vmem>>, %arg4: memref<8x36xf32, #tpu.memory_space<vmem>>, %arg5: memref<8x1xf32, #tpu.memory_space<vmem>>, %arg6: memref<1x8x256xf32, #tpu.memory_space<vmem>>, %arg7: memref<1x1x256xf32, #tpu.memory_space<vmem>>) attributes {dimension_semantics = [#tpu.dimension_semantics<parallel>, #tpu.dimension_semantics<parallel>], iteration_bounds = array<i64: 2, 1>, scalar_prefetch = 0 : i64, scratch_operands = 0 : i64, tpu.core_type = #tpu.core_type<tc>, window_params = [{transform_indices = @transform_0, window_bounds = array<i64: 1, 36, 256>}, {transform_indices = @transform_1, window_bounds = array<i64: 1, 9, 256>}, {pipeline_mode = #tpu.pipeline_mode<synchronous>, transform_indices = @transform_2, window_bounds = array<i64: 8, 36>}, {pipeline_mode = #tpu.pipeline_mode<synchronous>, transform_indices = @transform_3, window_bounds = array<i64: 8, 1>}, {transform_indices = @transform_4, window_bounds = array<i64: 1, 8, 256>}, {transform_indices = @transform_5, window_bounds = array<i64: 1, 1, 256>}]} {
    %c0 = arith.constant 0 : index
    %c0_0 = arith.constant 0 : index
    %c0_1 = arith.constant 0 : index
    %0 = vector.load %arg2[%c0, %c0_0, %c0_1] : memref<1x36x256xf32, #tpu.memory_space<vmem>>, vector<1x36x256xf32>
    %1 = vector.shape_cast %0 : vector<1x36x256xf32> to vector<36x256xf32>
    %c0_2 = arith.constant 0 : index
    %c0_3 = arith.constant 0 : index
    %2 = vector.load %arg4[%c0_2, %c0_3] : memref<8x36xf32, #tpu.memory_space<vmem>>, vector<8x36xf32>
    %cst = arith.constant dense<0.000000e+00> : vector<8x256xf32>
    %3 = tpu.matmul %2, %1, %cst {dimension_numbers = #tpu.dot_dimension_numbers<[1], [0], [0], [1], [0, 0, 1, 1], [], []>} : vector<8x36xf32>, vector<36x256xf32>, vector<8x256xf32> -> vector<8x256xf32>
    %c0_4 = arith.constant 0 : index
    %c0_5 = arith.constant 0 : index
    %c0_6 = arith.constant 0 : index
    %4 = vector.load %arg3[%c0_4, %c0_5, %c0_6] : memref<1x9x256xf32, #tpu.memory_space<vmem>>, vector<1x9x256xf32>
    %5 = vector.shape_cast %4 : vector<1x9x256xf32> to vector<9x256xf32>
    %cst_7 = arith.constant dense<0.000000e+00> : vector<256xf32>
    %6 = vector.multi_reduction <add>, %5, %cst_7 [0] : vector<9x256xf32> to vector<256xf32>
    %7 = vector.shape_cast %6 : vector<256xf32> to vector<1x256xf32>
    %cst_8 = arith.constant 0.000000e+00 : f32
    %8 = vector.broadcast %cst_8 : f32 to vector<1x256xf32>
    %9 = arith.cmpf oeq, %7, %8 : vector<1x256xf32>
    %cst_9 = arith.constant 1.000000e+00 : f32
    %10 = vector.broadcast %cst_9 : f32 to vector<1x256xf32>
    %11 = arith.select %9, %10, %7 : vector<1x256xi1>, vector<1x256xf32>
    %12 = tpu.reciprocal %11 : vector<1x256xf32> -> vector<1x256xf32>
    %13 = vector.broadcast %12 : vector<1x256xf32> to vector<8x256xf32>
    %14 = arith.mulf %3, %13 : vector<8x256xf32>
    %c0_10 = arith.constant 0 : index
    %c0_11 = arith.constant 0 : index
    %15 = vector.load %arg5[%c0_10, %c0_11] : memref<8x1xf32, #tpu.memory_space<vmem>>, vector<8x1xf32>
    %16 = vector.broadcast %15 : vector<8x1xf32> to vector<8x256xf32>
    %17 = arith.addf %14, %16 : vector<8x256xf32>
    %cst_12 = arith.constant 0.000000e+00 : f32
    %18 = vector.shape_cast %9 : vector<1x256xi1> to vector<1x256xi1>
    %19 = vector.broadcast %18 : vector<1x256xi1> to vector<8x256xi1>
    %20 = vector.broadcast %cst_12 : f32 to vector<8x256xf32>
    %21 = arith.select %19, %20, %17 : vector<8x256xi1>, vector<8x256xf32>
    %c0_13 = arith.constant 0 : index
    %c0_14 = arith.constant 0 : index
    %c0_15 = arith.constant 0 : index
    %22 = vector.load %arg6[%c0_13, %c0_14, %c0_15] : memref<1x8x256xf32, #tpu.memory_space<vmem>>, vector<1x8x256xf32>
    %23 = vector.shape_cast %22 : vector<1x8x256xf32> to vector<8x256xf32>
    %24 = vector.shape_cast %21 : vector<8x256xf32> to vector<1x8x256xf32>
    tpu.vector_store %arg6[%c0_13, %c0_14, %c0_15], %24 {strides = array<i32>} : memref<1x8x256xf32, #tpu.memory_space<vmem>>, vector<1x8x256xf32>,
    %cst_16 = arith.constant dense<true> : vector<1x256xi1>
    %25 = arith.xori %9, %cst_16 : vector<1x256xi1>
    %26 = arith.extui %25 : vector<1x256xi1> to vector<1x256xi32>
    %27 = arith.sitofp %26 : vector<1x256xi32> to vector<1x256xf32>
    %c0_17 = arith.constant 0 : index
    %c0_18 = arith.constant 0 : index
    %c0_19 = arith.constant 0 : index
    %28 = vector.load %arg7[%c0_17, %c0_18, %c0_19] : memref<1x1x256xf32, #tpu.memory_space<vmem>>, vector<1x1x256xf32>
    %29 = vector.shape_cast %28 : vector<1x1x256xf32> to vector<1x256xf32>
    %30 = vector.shape_cast %27 : vector<1x256xf32> to vector<1x1x256xf32>
    tpu.vector_store %arg7[%c0_17, %c0_18, %c0_19], %30 {strides = array<i32>} : memref<1x1x256xf32, #tpu.memory_space<vmem>>, vector<1x1x256xf32>,
    return
  }
  func.func @transform_0(%arg0: i32, %arg1: i32) -> (i32, i32, i32) {
    %c0_i32 = arith.constant 0 : i32
    %c0_i32_0 = arith.constant 0 : i32
    return %arg0, %c0_i32, %arg1 : i32, i32, i32
  }
  func.func @transform_1(%arg0: i32, %arg1: i32) -> (i32, i32, i32) {
    %c0_i32 = arith.constant 0 : i32
    %c0_i32_0 = arith.constant 0 : i32
    return %arg0, %c0_i32, %arg1 : i32, i32, i32
  }
  func.func @transform_2(%arg0: i32, %arg1: i32) -> (i32, i32) {
    %c0_i32 = arith.constant 0 : i32
    %c0_i32_0 = arith.constant 0 : i32
    %c0_i32_1 = arith.constant 0 : i32
    return %c0_i32, %c0_i32_0 : i32, i32
  }
  func.func @transform_3(%arg0: i32, %arg1: i32) -> (i32, i32) {
    %c0_i32 = arith.constant 0 : i32
    %c0_i32_0 = arith.constant 0 : i32
    %c0_i32_1 = arith.constant 0 : i32
    return %c0_i32, %c0_i32_0 : i32, i32
  }
  func.func @transform_4(%arg0: i32, %arg1: i32) -> (i32, i32, i32) {
    %c0_i32 = arith.constant 0 : i32
    %c0_i32_0 = arith.constant 0 : i32
    return %arg0, %c0_i32, %arg1 : i32, i32, i32
  }
  func.func @transform_5(%arg0: i32, %arg1: i32) -> (i32, i32, i32) {
    %c0_i32 = arith.constant 0 : i32
    %c0_i32_0 = arith.constant 0 : i32
    return %arg0, %c0_i32, %arg1 : i32, i32, i32
  }
}

</mosaic_0001>

<bundles_post_ra>
// kernel: tpu_custom_call.1
= control target key start
LH: loop header
LB: loop body
LE: loop exit
PB: predicated region body
PF: predicated region fallthrough
CT: control target
= control target key end

     0   :  { %11 = vsyncpa [#allocation3], 0  ;;  %s1067_s0 = inlined_call_operand.vmem [shape: f32[2,36,256], index: 0, kind: input, shape index: {}]   ;;  %s1068_s1 = inlined_call_operand.vmem [shape: f32[2,9,256], index: 1, kind: input, shape index: {}]   ;;  %s1069_s2 = inlined_call_operand.vmem [shape: f32[8,36], index: 2, kind: input, shape index: {}]   ;;  %s1070_s3 = inlined_call_operand.vmem [shape: f32[8,1], index: 3, kind: input, shape index: {}]   ;;  %s1071_s4 = inlined_call_operand.hbm [shape: f32[2,8,256], index: 4, kind: output, shape index: {0}]   ;;  %s1072_s5 = inlined_call_operand.hbm [shape: f32[2,1,256], index: 5, kind: output, shape index: {1}]  }
   0x1   :  { %13 = vsyncpa [#allocation3 + $0x1], 0 }
   0x2   :  { %14 = vsyncpa [#allocation5], 0 }
   0x3   :  { %16 = vsyncpa [#allocation5 + $0x1], 0  ;;  %s890_s18 = smov 0   ;;  %s892_s19 = smov 0  }
   0x4   :  { %s894_s20 = smov 0   ;;  %s896_s21 = smov 0  }
   0x5   :  { %s898_s22 = smov 0   ;;  %s900_s23 = smov 0  }
   0x6 LB: > { %s638_s24 = sadd.s32 4294967295, %s852_s23   ;;  %s639_s25 = sadd.s32 4294967294, %s852_s23   ;;  %s852_s23 = sphi %s900_s23, %s22_s23   ;;  %s848_s22 = sphi %s898_s22, %s1079_s22   ;;  %s844_s21 = sphi %s896_s21, %s1078_s21   ;;  %s840_s20 = sphi %s894_s20, %s1077_s20   ;;  %s836_s19 = sphi %s892_s19, %s1076_s19   ;;  %s832_s18 = sphi %s890_s18, %s1075_s18  }
   0x7   : > { %s34_s26 = sadd.s32 1, %s848_s22  ;;  %s141_s27 = sadd.s32 1, %s840_s20 }
   0x8   : > { %p36_p0 = scmp.ge.s32.totalorder %s34_s26, 2  ;;  %p151_p1 = scmp.ne.s32.totalorder %s840_s20, %s836_s19 }
   0x9   : > { %p152_p2 = scmp.eq.s32.totalorder %s638_s24, 1  ;;  %p157_p3 = scmp.ne.s32.totalorder %s836_s19, %s832_s18 }
   0xa   : > { %s1081_s26 = smov (%p36_p0, %s34_s26), 0  ;;  %p158_p5 = scmp.eq.s32.totalorder %s639_s25, 1 }
   0xb   : > { %p930_p4 = por %p152_p2, %p151_p1  ;;  %s136_s29 = ssub.s32 %s848_s22, %s1081_s26 }
   0xc   : > { %p642_p6 = scmp.ge.s32.totalorder %s852_s23, 1  ;;  %p139_p7 = scmp.eq.s32.totalorder %s136_s29, 0 }
   0xd   : > { %p937_p8 = por %p158_p5, %p157_p3  ;;  %p236_p9 = scmp.lt.s32.totalorder %s852_s23, 3 }
   0xe   : > { %s943_s6 = scalar_select %p139_p7, %s840_s20, %s141_s27  }
   0xf   : > { %p237_p10 = pnand %p642_p6, %p236_p9 }
  0x10   : > { %p283_p11 = scmp.lt.s32.totalorder (!%p237_p10), %s844_s21, 1  ;;  %v854_v0 = vmov (!%p237_p10), 0.0   ;;  %v426_v1 = vld [vmem:[%s1070_s3] sm:$0xff] (!%p237_p10)  ;;  %v855_v2 = vmov (!%p237_p10), 0   ;;  %vm319_vm0 = vcmask (!%p237_p10), 1043456   ;;  %vm315_vm1 = vcmask (!%p237_p10), 293888  }
  0x11   : > { %240 = sbr.rel (%p237_p10) target bundleno = 274 (0x112), region = 36  ;;  %390 = vmatprep.mubr.f32.mxu0 (!%p237_p10), %v854_v0  ;;  %737 = vset.pattern.permute.xlu0 (!%p237_p10), %v855_v2  ;;  %v314_v17 = vld [vmem:[%s1069_s2] sm:$0xff] (!%p237_p10)  ;;  %vm401_vm2 = vcmask (!%p237_p10), 1040384   ;;  %v856_v38 = vmov (!%p237_p10), 1966171168   ;;  %v454_v40 = vlaneseq (!%p237_p10)  ;;  %vm857_vm5 = vmmov (!%p237_p10), 1  }
  0x12   : > { %429 = vperm.xlu0 (!%p237_p10), %737, %v426_v1   ;;  %v452_v39 = vunpack.c.l.s4 (!%p237_p10), %v856_v38  ;;  %s977_s27 = sand.u32 (!%p237_p10), 1, %s836_s19   ;;  %s663_s8 = sshll.u32 (!%p237_p10), %s844_s21, 5 }
  0x13   : > { %v455_v42 = vshrl.u32 (!%p237_p10), %v454_v40, 7  ;;  %s644_s29 = sshll.u32 (!%p237_p10), %s977_s27, 1  ;;  %vm468_vm8 = vcmp.lt.s32.totalorder (!%p237_p10), %v454_v40, 256  ;;  %s984_s12 = scalar_lea.hbm (!%p237_p10), %s1072_s5, %s663_s8 }
  0x14   : > { %v453_v41 = vunpack.c.0.s8 (!%p237_p10), %v452_v39  ;;  %s281_s7 = scalar_lea.vmem (!%p237_p10), [#allocation4], %s644_s29  ;;  %s858_s15 = smov (!%p237_p10), [#allocation4]  }
  0x16   : > { %v456_v46 = vsub.s32 (!%p237_p10), %v453_v41, %v455_v42 }
  0x18   : > { %s951_s9 = scalar_select %p283_p11, %s844_s21, 1 }
  0x1a   : > { %s672_s10 = smul.u32 80, %s951_s9  ;;  %s661_s16 = sshll.u32 %s951_s9, 5 }
  0x1b   : > { %s300_s25 = scalar_lea.vmem %s1068_s1, %s661_s16  ;;  %s509_s9 = sshll.u32 %s281_s7, 4  ;;  %s510_s9 = int_to_ptr.vmem [resolvable:$true] %s509_s9 }
  0x1c   : > { %s290_s13 = scalar_lea.vmem %s1067_s0, %s672_s10  ;;  %v399_v18 = vld [vmem:[%s300_s25 + $0x10] sm:$0x1]  ;;  %v400_v19 = vld [vmem:[%s300_s25 + $0x18] sm:$0x1]  ;;  %v397_v20 = vld [vmem:[%s300_s25] sm:$0xff]  ;;  %s742_s14 = scalar_lea.vmem %s510_s9, 32 }
  0x1d   : > { %v305_v3 = vld [vmem:[%s290_s13 + $0x8] sm:$0xff]  ;;  %v307_v4 = vld [vmem:[%s290_s13 + $0x18] sm:$0xff]  ;;  %v304_v5 = vld [vmem:[%s290_s13] sm:$0xff]  ;;  %v402_v21 = vsel %vm401_vm2, %v399_v18, 0.0  ;;  %v410_v23 = vsel %vm401_vm2, %v400_v19, 0.0  ;;  %p743_p12 = scmp.ne.s32.totalorder %s510_s9, %s742_s14  ;;  %s746_s16 = sshll.u32 %s858_s15, 4  ;;  %s747_s16 = int_to_ptr.vmem [resolvable:$false] %s746_s16 }
  0x1e   : > { %v664_v6 = vpack.c.bf16 %v307_v4, %v305_v3  ;;  %v306_v7 = vld [vmem:[%s290_s13 + $0x10] sm:$0xff]  ;;  %v309_v8 = vld [vmem:[%s290_s13 + $0x28] sm:$0xff]  ;;  %v311_v9 = vld [vmem:[%s290_s13 + $0x38] sm:$0xff]  ;;  %v403_v24 = vadd.f32 %v402_v21, %v397_v20  ;;  %s748_s17 = scalar_lea.vmem %s747_s16, 64  ;;  %p749_p1 = scmp.lt.s32.totalorder %s510_s9, %s747_s16 }
  0x1f   : > { %v666_v10 = vpack.c.bf16 %v306_v7, %v304_v5  ;;  %v668_v11 = vpack.c.bf16 %v311_v9, %v309_v8  ;;  %v308_v12 = vld [vmem:[%s290_s13 + $0x20] sm:$0xff]  ;;  %v310_v13 = vld [vmem:[%s290_s13 + $0x30] sm:$0xff]  ;;  %v313_v15 = vld [vmem:[%s290_s13 + $0x48] sm:$0xf]  ;;  %p744_p13 = pnand %p743_p12, %p930_p4  ;;  %p750_p2 = scmp.lt.s32.totalorder %s748_s17, %s742_s14 }
  0x20   : > { %665 = vmatprep.subr.bf16.mxu0 %v664_v6  ;;  %v670_v14 = vpack.c.bf16 %v310_v13, %v308_v12  ;;  %v312_v16 = vld [vmem:[%s290_s13 + $0x40] sm:$0xf]  ;;  %v398_v22 = vld [vmem:[%s300_s25 + $0x8] sm:$0xff]  ;;  %v404_v26 = vrot.slane %v403_v24, 4  ;;  %s477_s13 = scalar_lea.sflag [#allocation5], %s977_s27 }
  0x21   : > { %667 = vmatpush1.bf16.msra.mxu0 %v666_v10  ;;  %v411_v25 = vadd.f32 %v410_v23, %v398_v22  ;;  %p745_p0 = pneg %p744_p13  ;;  %p751_p3 = por %p750_p2, %p749_p1 }
  0x22   : > { %669 = vmatprep.subr.bf16.mxu0 %v668_v11  ;;  %v405_v28 = vadd.f32 %v404_v26, %v403_v24 }
  0x23   : > { %v412_v27 = vrot.slane %v411_v25, 4  ;;  %p752_p5 = pnand %p751_p3, %p745_p0 }
  0x24   : > { %v406_v30 = vrot.slane %v405_v28, 2 }
  0x25   : > { %671 = vmatpush1.bf16.msra.mxu0 %v670_v14  ;;  %v413_v29 = vadd.f32 %v412_v27, %v411_v25 }
  0x26   : > { %648 = vmatprep.subr.msk.mxu0 %vm319_vm0, %v313_v15  ;;  %v407_v32 = vadd.f32 %v406_v30, %v405_v28 }
  0x27   : > { %v414_v31 = vrot.slane %v413_v29, 2 }
  0x28   : > { %v408_v34 = vrot.slane %v407_v32, 1 }
  0x29   : > { %649 = vmatpush1.msk.msra.mxu0 %vm319_vm0, %v312_v16  ;;  %v415_v33 = vadd.f32 %v414_v31, %v413_v29 }
  0x2a   : > { %650 = vmatmul.mubr.msk.f32.vlgmr.msra.gmra.mrb[0].mxu0 %vm315_vm1, %v314_v17  ;;  %v964_v36 = vadd.f32 %v408_v34, %v407_v32 }
  0x2b   : > { %v416_v35 = vrot.slane %v415_v33, 1 }
  0x2c   : > { %vm418_vm3 = vcmp.eq.f32.partialorder %v964_v36, 0.0 }
  0x2d   : > { %v966_v37 = vadd.f32 %v416_v35, %v415_v33  ;;  %vm442_vm6 = vmxor %vm418_vm3, %vm857_vm5 }
  0x2e   : > { %v651_v43 = vsel %vm442_vm6, 1.0, %v854_v0 }
  0x2f   : > { %vm419_vm4 = vcmp.eq.f32.partialorder %v966_v37, 0.0 }
  0x30   : > { %vm443_vm7 = vmxor %vm419_vm4, %vm857_vm5 }
  0x31   : > { %v652_v44 = vsel %vm443_vm7, 1.0, %v854_v0 }
  0x32   : > { %v450_v45 = vcombine.low %v651_v43, %v652_v44 }
  0x34   : > { %v457_v47 = vrot.slane %v450_v45, %v456_v46 }
  0x36   : > { %v464_v48 = vrot.slane %v457_v47, %v456_v46 }
  0x38   : > { %470 = vst.msk [vmem:[%s281_s7] sm:$0x3] %vm468_vm8, %v464_v48 }
  0x39   : > { %755 = shalt.err (!%p752_p5)
}
  0x3a   : > { %s756_s24 = scalar_lea.hbm %s984_s12, 32  ;;  %s760_s7 = scalar_lea.hbm %s1072_s5, 64 }
  0x3b   : > { %p757_p6 = scmp.ne.s32.totalorder %s984_s12, %s756_s24  ;;  %p761_p10 = scmp.lt.u32.totalorder %s984_s12, %s1072_s5 }
  0x3c   : > { %p762_p11 = scmp.lt.u32.totalorder %s760_s7, %s756_s24  ;;  %p764_p13 = scmp.lt.u32.totalorder %s756_s24, %s984_s12 }
  0x3d   : > { %p758_p7 = pnand %p757_p6, %p930_p4 }
  0x3e   : > { %p763_p12 = por %p762_p11, %p761_p10 }
  0x3f   : > { %p759_p9 = pneg %p758_p7 }
  0x40   : > { %p765_p0 = por %p764_p13, %p763_p12 }
  0x42   : > { %p766_p1 = pnand %p765_p0, %p759_p9 }
  0x44   : > { %769 = shalt.err (!%p766_p1)
}
  0x45   : > { %674 = dma.vmem_to_hbm [thread:$0]  (%p930_p4), %s510_s9, 32, %s984_s12, %s477_s13   ;;  %v420_v49 = vsel %vm418_vm3, 1.0, %v964_v36  ;;  %v421_v50 = vsel %vm419_vm4, 1.0, %v966_v37 }
  0x46   : > { %738 = vrcp.f32 %v420_v49  ;;  %s643_s11 = sshll.u32 %s977_s27, 4  ;;  %s662_s9 = sshll.u32 %s844_s21, 8 }
  0x47   : > { %740 = vrcp.f32 %v421_v50  ;;  %s274_s12 = scalar_lea.vmem [#allocation2], %s643_s11  ;;  %s1017_s16 = scalar_lea.hbm %s1071_s4, %s662_s9 }
  0x48   : > { %s493_s13 = sshll.u32 %s274_s12, 4  ;;  %s472_s21 = scalar_lea.sflag [#allocation3], %s977_s27  ;;  %s1019_s13 = int_to_ptr.vmem [resolvable:$true] %s493_s13 }
  0x49   : > { %s770_s17 = scalar_lea.vmem %s1019_s13, 256  ;;  %s859_s24 = smov [#allocation2]  }
  0x4a   : > { %p771_p2 = scmp.ne.s32.totalorder %s1019_s13, %s770_s17  ;;  %s774_s25 = sshll.u32 %s859_s24, 4  ;;  %s775_s25 = int_to_ptr.vmem [resolvable:$false] %s774_s25 }
  0x4b   : > { %s776_s29 = scalar_lea.vmem %s775_s25, 512  ;;  %p777_p6 = scmp.lt.s32.totalorder %s1019_s13, %s775_s25 }
  0x4c   : > { %p772_p3 = pnand %p771_p2, %p930_p4  ;;  %p778_p7 = scmp.lt.s32.totalorder %s776_s29, %s770_s17 }
  0x4e   : > { %p773_p5 = pneg %p772_p3  ;;  %p779_p9 = por %p778_p7, %p777_p6 }
  0x50   : > { %v739_v51 = vpop.eup %738  ;;  %p780_p10 = pnand %p779_p9, %p773_p5 }
  0x51   : > { %v741_v52 = vpop.eup %740 }
  0x91   : > { %v430_v54 = vpop.permute.xlu0 %429 }
  0xfd   : > { %v392_v53 = vpop.f32.mrb[0].mxu0 }
  0xfe   : > { %v424_v55 = vmul.f32 %v739_v51, %v392_v53  ;;  %v394_v56 = vpop.f32.mrb[1].mxu0 }
  0xff   : > { %v425_v57 = vmul.f32 %v741_v52, %v394_v56 }
 0x100   : > { %v432_v58 = vadd.f32 %v430_v54, %v424_v55 }
 0x101   : > { %v433_v59 = vadd.f32 %v430_v54, %v425_v57 }
 0x102   : > { %v438_v60 = vsel %vm418_vm3, 0.0, %v432_v58 }
 0x103   : > { %v439_v61 = vsel %vm419_vm4, 0.0, %v433_v59  ;;  %440 = vst [vmem:[%s274_s12] sm:$0xff] %v438_v60 }
 0x104   : > { %441 = vst [vmem:[%s274_s12 + $0x8] sm:$0xff] %v439_v61 }
 0x105   : > { %783 = shalt.err (!%p780_p10)
}
 0x106   : > { %s784_s27 = scalar_lea.hbm %s1017_s16, 256  ;;  %s788_s10 = scalar_lea.hbm %s1071_s4, 512 }
 0x107   : > { %p785_p11 = scmp.ne.s32.totalorder %s1017_s16, %s784_s27  ;;  %p789_p0 = scmp.lt.u32.totalorder %s1017_s16, %s1071_s4 }
 0x108   : > { %p790_p1 = scmp.lt.u32.totalorder %s788_s10, %s784_s27  ;;  %p792_p3 = scmp.lt.u32.totalorder %s784_s27, %s1017_s16 }
 0x109   : > { %p786_p12 = pnand %p785_p11, %p930_p4 }
 0x10a   : > { %p791_p2 = por %p790_p1, %p789_p0 }
 0x10b   : > { %p787_p13 = pneg %p786_p12 }
 0x10c   : > { %p793_p5 = por %p792_p3, %p791_p2 }
 0x10e   : > { %p794_p6 = pnand %p793_p5, %p787_p13 }
 0x110   : > { %797 = shalt.err (!%p794_p6)
}
 0x111   : > { %673 = dma.vmem_to_hbm [thread:$0]  (%p930_p4), %s1019_s13, 256, %s1017_s16, %s472_s21  }
 0x112 PF: > { %p684_p7 = scmp.ge.s32.totalorder %s852_s23, 2  ;;  %s521_s12 = sand.u32 1, %s832_s18  }
 0x113   : > { %s522_s14 = scalar_lea.sflag [#allocation3], %s521_s12 }
 0x114   : > { %p678_p9 = pnand %p684_p7, %p937_p8 }
 0x116   : > { %823 = dma.done.wait (!%p678_p9), %s522_s14, 256  }
 0x117   : > { %825 = vsyncadd (!%p678_p9), %s522_s14, 4294967040  ;;  %s531_s15 = scalar_lea.sflag [#allocation5], %s521_s12 }
 0x118   : > { %827 = dma.done.wait (!%p678_p9), %s531_s15, 32  }
 0x119   : > { %829 = vsyncadd (!%p678_p9), %s531_s15, 4294967264  ;;  %s22_s23 = sadd.s32 1, %s852_s23   ;;  %s1075_s18 = smov %s836_s19 }
 0x11a   : > { %p19_p10 = scmp.ge.s32.totalorder %s22_s23, 4   ;;  %s1076_s19 = smov %s840_s20 }
 0x11b   : > { %s1077_s20 = smov %s943_s6  ;;  %s1078_s21 = smov %s848_s22 }
 0x11c   : > { %s1079_s22 = smov %s1081_s26  ;;  %21 = sbr.rel (!%p19_p10) target bundleno = 6 (0x6), region = 91 }
 0x123   :  { %536 = vsyncpa [#allocation3], 1 }
 0x124   :  { %538 = vsyncpa [#allocation3 + $0x1], 1 }
 0x125   :  { %539 = vsyncpa [#allocation5], 1 }
 0x126   :  { %541 = vsyncpa [#allocation5 + $0x1], 1 }

</bundles_post_ra>
